<compile_context>
chip_gen: v6e
topology: v6e:2x2x1
jax: 0.10.0
libtpu: 0.0.40
codegen_flags: <defaults>
</compile_context>

<pallas_src>
import functools

import jax
import jax.numpy as jnp
from jax.experimental import pallas as pl
from jax.experimental.pallas import tpu as pltpu

_LANE = 128
_SUBLANE = 8
# per-step padded VMEM bytes; x2 for double buffering stays <= ~28 MiB everywhere
_VMEM_STEP_BUDGET = 14 * 1024 * 1024


def _round_up(x: int, m: int) -> int:
    return ((x + m - 1) // m) * m


def _round_down(x: int, m: int) -> int:
    return (x // m) * m


def _choose_tiling(B, C_in, C_out, N, itemsize, target_step_bytes):
    """Pick (b_blk, tile) so each grid step moves multi-MiB of HBM traffic while
    double-buffered VMEM stays well under every generation's physical limit."""
    logical_per_lane = (C_in + C_out) * itemsize            # HBM bytes / pixel / batch elem
    padded_per_lane = (_round_up(C_in, _SUBLANE) + _round_up(C_out, _SUBLANE)) * itemsize
    want = max(_LANE, target_step_bytes // logical_per_lane)   # desired b_blk * tile
    cap = max(_LANE, _VMEM_STEP_BUDGET // padded_per_lane)     # VMEM-allowed b_blk * tile
    budget = min(want, cap)

    if N >= budget:
        # One batch element per step; tile the pixel axis (multiple of 128 lanes).
        tile = _round_down(budget, _LANE)
        if tile >= N:
            tile = N
        return 1, tile

    # Whole pixel axis per step (full-dim block, no alignment constraint);
    # fold several batch elements per step to amortize per-step overhead.
    tile = N
    lanes_per_batch = _round_up(N, _LANE)
    b_blk = max(1, budget // lanes_per_batch)
    b_blk = min(b_blk, B)
    while B % b_blk:        # keep full batch blocks (no partial leading-dim blocks)
        b_blk -= 1
    return b_blk, tile


def _residual_kernel(x_ref, w_ref, shift_ref, o_ref):
    # x_ref:     (b_blk, C_in, tile)   channels on sublanes, pixels on lanes
    # w_ref:     (C_out, C_in)         BN-scale folded weights (resident)
    # shift_ref: (C_out, 1)            folded bias/BN shift, broadcast over lanes
    # o_ref:     (b_blk, C_out, tile)  lane-dense output
    w = w_ref[...]
    shift = shift_ref[...]
    b_blk = x_ref.shape[0]

    def one(b):
        acc = jnp.dot(w, x_ref[b], preferred_element_type=jnp.float32)
        o_ref[b] = jnp.maximum(acc + shift, 0.0).astype(o_ref.dtype)

    if b_blk <= 8:
        for b in range(b_blk):          # short static unroll
            one(b)
    else:
        def body(b, carry):
            one(b)
            return carry
        jax.lax.fori_loop(0, b_blk, body, 0)


@functools.partial(jax.jit, static_argnames=("target_step_bytes",))
def residual_module_mi(x_nchw, conv_w, conv_b, gamma, beta, run_mean, run_var,
                       eps=1e-5, *, target_step_bytes=8 * 1024 * 1024):
    """Forward of _ResidualModuleMI (Conv2d 1x1 -> BatchNorm2d(eval) -> ReLU).

    x_nchw : (B, C_in, H, W)
    conv_w : (C_out, C_in)   1x1 Conv2d weight squeezed from (C_out, C_in, 1, 1)
    conv_b : (C_out,)
    gamma, beta, run_mean, run_var : (C_out,)
    returns: (B, C_out, H, W), same dtype as x
    """
    B, C_in, H, W = x_nchw.shape
    C_out = conv_w.shape[0]
    N = H * W
    dtype = x_nchw.dtype
    itemsize = jnp.dtype(dtype).itemsize

    # --- fold conv bias + eval-mode BN into weight / shift (exact algebra) ---
    inv_std = jax.lax.rsqrt(run_var.astype(jnp.float32) + eps)
    scale = gamma.astype(jnp.float32) * inv_std                           # (C_out,)
    w_folded = (conv_w.astype(jnp.float32) * scale[:, None]).astype(dtype)  # (C_out, C_in)
    shift = ((conv_b.astype(jnp.float32) - run_mean.astype(jnp.float32)) * scale
             + beta.astype(jnp.float32)).reshape(C_out, 1)                # (C_out, 1) f32

    # --- NCHW -> (B, C_in, N): free reshape, no transpose, no pad, no extra HBM pass ---
    x = x_nchw.reshape(B, C_in, N)

    b_blk, tile = _choose_tiling(B, C_in, C_out, N, itemsize, target_step_bytes)
    grid = (B // b_blk, pl.cdiv(N, tile))   # ragged pixel tail handled by Pallas masking

    cost = pl.CostEstimate(
        flops=2 * B * N * C_in * C_out,
        transcendentals=0,
        bytes_accessed=itemsize * B * N * (C_in + C_out) + 4 * C_out * (C_in + 1),
    )

    out = pl.pallas_call(
        _residual_kernel,
        out_shape=jax.ShapeDtypeStruct((B, C_out, N), dtype),
        grid_spec=pl.GridSpec(
            grid=grid,
            in_specs=[
                # x: batch block, channels on sublanes, pixel tile on lanes
                pl.BlockSpec((b_blk, C_in, tile), lambda bi, ni: (bi, 0, ni)),
                # folded weights (whole, resident)
                pl.BlockSpec((C_out, C_in), lambda bi, ni: (0, 0)),
                # folded shift (whole, resident)
                pl.BlockSpec((C_out, 1), lambda bi, ni: (0, 0)),
            ],
            out_specs=pl.BlockSpec((b_blk, C_out, tile), lambda bi, ni: (bi, 0, ni)),
        ),
        compiler_params=pltpu.CompilerParams(
            dimension_semantics=("parallel", "parallel"),
            vmem_limit_bytes=48 * 1024 * 1024,
        ),
        cost_estimate=cost,
    )(x, w_folded, shift)

    # (B, C_out, N) -> NCHW is a free reshape
    return out.reshape(B, C_out, H, W)


def _reference(x_nchw, conv_w, conv_b, gamma, beta, run_mean, run_var, eps=1e-5):
    # pure-JAX reference of Conv2d(1x1) + BatchNorm2d(eval) + ReLU in NCHW
    y = jnp.einsum("bchw,fc->bfhw", x_nchw, conv_w) + conv_b[None, :, None, None]
    y = (y - run_mean[None, :, None, None]) / jnp.sqrt(run_var + eps)[None, :, None, None]
    y = y * gamma[None, :, None, None] + beta[None, :, None, None]
    return jnp.maximum(y, 0.0)


def _run_case(key, B, C_in, H, W, n_filters, **kw):
    k_x, k_w, k_b, k_g, k_be, k_m, k_v = jax.random.split(key, 7)
    x = jax.random.normal(k_x, (B, C_in, H, W), dtype=jnp.float32)
    conv_w = jax.random.normal(k_w, (n_filters, C_in), dtype=jnp.float32) * 0.1
    conv_b = jax.random.normal(k_b, (n_filters,), dtype=jnp.float32) * 0.1
    gamma = 1.0 + 0.1 * jax.random.normal(k_g, (n_filters,), dtype=jnp.float32)
    beta = 0.1 * jax.random.normal(k_be, (n_filters,), dtype=jnp.float32)
    run_mean = 0.1 * jax.random.normal(k_m, (n_filters,), dtype=jnp.float32)
    run_var = jnp.abs(jax.random.normal(k_v, (n_filters,), dtype=jnp.float32)) + 0.5

    out = residual_module_mi(x, conv_w, conv_b, gamma, beta, run_mean, run_var, **kw)
    out = jax.block_until_ready(out)

    ref = _reference(x, conv_w, conv_b, gamma, beta, run_mean, run_var)
    assert out.shape == (B, n_filters, H, W)
    assert jnp.allclose(out, ref, atol=1e-5, rtol=1e-5), "mismatch vs reference"


if __name__ == "__main__":
    key = jax.random.PRNGKey(0)
    k1, k2, k3 = jax.random.split(key, 3)

    # Primary case (module-consistent small shapes): single-step, static batch loop.
    _run_case(k1, B=2, C_in=4, H=16, W=16, n_filters=8)
    # Larger batch block -> exercises the in-kernel fori_loop batch path.
    _run_case(k2, B=12, C_in=4, H=8, W=8, n_filters=8)
    # Pixel axis larger than one tile with a ragged tail -> exercises the
    # no-pad partial-last-block path (small traffic target forces tiling).
    _run_case(k3, B=1, C_in=4, H=125, W=160, n_filters=8,
              target_step_bytes=512 * 1024)

    print("KERNEL_OK")
</pallas_src>

<mosaic_0001>
module attributes {stable_mosaic.version = 11 : i64} {
  func.func @_residual_kernel(%arg0: i32, %arg1: i32, %arg2: memref<2x4x256xf32, #tpu.memory_space<vmem>>, %arg3: memref<8x4xf32, #tpu.memory_space<vmem>>, %arg4: memref<8x1xf32, #tpu.memory_space<vmem>>, %arg5: memref<2x8x256xf32, #tpu.memory_space<vmem>>) attributes {dimension_semantics = [#tpu.dimension_semantics<parallel>, #tpu.dimension_semantics<parallel>], iteration_bounds = array<i64: 1, 1>, scalar_prefetch = 0 : i64, scratch_operands = 0 : i64, tpu.core_type = #tpu.core_type<tc>, window_params = [{transform_indices = @transform_0, window_bounds = array<i64: 2, 4, 256>}, {pipeline_mode = #tpu.pipeline_mode<synchronous>, transform_indices = @transform_1, window_bounds = array<i64: 8, 4>}, {pipeline_mode = #tpu.pipeline_mode<synchronous>, transform_indices = @transform_2, window_bounds = array<i64: 8, 1>}, {transform_indices = @transform_3, window_bounds = array<i64: 2, 8, 256>}]} {
    %c0 = arith.constant 0 : index
    %c0_0 = arith.constant 0 : index
    %0 = vector.load %arg3[%c0, %c0_0] : memref<8x4xf32, #tpu.memory_space<vmem>>, vector<8x4xf32>
    %c0_1 = arith.constant 0 : index
    %c0_2 = arith.constant 0 : index
    %1 = vector.load %arg4[%c0_1, %c0_2] : memref<8x1xf32, #tpu.memory_space<vmem>>, vector<8x1xf32>
    %c0_3 = arith.constant 0 : index
    %c0_4 = arith.constant 0 : index
    %c0_5 = arith.constant 0 : index
    %2 = vector.load %arg2[%c0_3, %c0_4, %c0_5] : memref<2x4x256xf32, #tpu.memory_space<vmem>>, vector<1x4x256xf32>
    %3 = vector.shape_cast %2 : vector<1x4x256xf32> to vector<4x256xf32>
    %cst = arith.constant dense<0.000000e+00> : vector<8x256xf32>
    %4 = tpu.matmul %0, %3, %cst {dimension_numbers = #tpu.dot_dimension_numbers<[1], [0], [0], [1], [0, 0, 1, 1], [], []>} : vector<8x4xf32>, vector<4x256xf32>, vector<8x256xf32> -> vector<8x256xf32>
    %5 = vector.broadcast %1 : vector<8x1xf32> to vector<8x256xf32>
    %6 = arith.addf %4, %5 : vector<8x256xf32>
    %cst_6 = arith.constant 0.000000e+00 : f32
    %7 = vector.broadcast %cst_6 : f32 to vector<8x256xf32>
    %8 = arith.maximumf %6, %7 : vector<8x256xf32>
    %c0_7 = arith.constant 0 : index
    %c0_8 = arith.constant 0 : index
    %c0_9 = arith.constant 0 : index
    %9 = vector.load %arg5[%c0_7, %c0_8, %c0_9] : memref<2x8x256xf32, #tpu.memory_space<vmem>>, vector<1x8x256xf32>
    %10 = vector.shape_cast %9 : vector<1x8x256xf32> to vector<8x256xf32>
    %11 = vector.shape_cast %8 : vector<8x256xf32> to vector<1x8x256xf32>
    tpu.vector_store %arg5[%c0_7, %c0_8, %c0_9], %11 {strides = array<i32>} : memref<2x8x256xf32, #tpu.memory_space<vmem>>, vector<1x8x256xf32>,
    %c1 = arith.constant 1 : index
    %c0_10 = arith.constant 0 : index
    %c0_11 = arith.constant 0 : index
    %12 = vector.load %arg2[%c1, %c0_10, %c0_11] : memref<2x4x256xf32, #tpu.memory_space<vmem>>, vector<1x4x256xf32>
    %13 = vector.shape_cast %12 : vector<1x4x256xf32> to vector<4x256xf32>
    %cst_12 = arith.constant dense<0.000000e+00> : vector<8x256xf32>
    %14 = tpu.matmul %0, %13, %cst_12 {dimension_numbers = #tpu.dot_dimension_numbers<[1], [0], [0], [1], [0, 0, 1, 1], [], []>} : vector<8x4xf32>, vector<4x256xf32>, vector<8x256xf32> -> vector<8x256xf32>
    %15 = vector.broadcast %1 : vector<8x1xf32> to vector<8x256xf32>
    %16 = arith.addf %14, %15 : vector<8x256xf32>
    %cst_13 = arith.constant 0.000000e+00 : f32
    %17 = vector.broadcast %cst_13 : f32 to vector<8x256xf32>
    %18 = arith.maximumf %16, %17 : vector<8x256xf32>
    %c1_14 = arith.constant 1 : index
    %c0_15 = arith.constant 0 : index
    %c0_16 = arith.constant 0 : index
    %19 = vector.load %arg5[%c1_14, %c0_15, %c0_16] : memref<2x8x256xf32, #tpu.memory_space<vmem>>, vector<1x8x256xf32>
    %20 = vector.shape_cast %19 : vector<1x8x256xf32> to vector<8x256xf32>
    %21 = vector.shape_cast %18 : vector<8x256xf32> to vector<1x8x256xf32>
    tpu.vector_store %arg5[%c1_14, %c0_15, %c0_16], %21 {strides = array<i32>} : memref<2x8x256xf32, #tpu.memory_space<vmem>>, vector<1x8x256xf32>,
    return
  }
  func.func @transform_0(%arg0: i32, %arg1: i32) -> (i32, i32, i32) {
    %c0_i32 = arith.constant 0 : i32
    %c0_i32_0 = arith.constant 0 : i32
    return %arg0, %c0_i32, %arg1 : i32, i32, i32
  }
  func.func @transform_1(%arg0: i32, %arg1: i32) -> (i32, i32) {
    %c0_i32 = arith.constant 0 : i32
    %c0_i32_0 = arith.constant 0 : i32
    %c0_i32_1 = arith.constant 0 : i32
    return %c0_i32, %c0_i32_0 : i32, i32
  }
  func.func @transform_2(%arg0: i32, %arg1: i32) -> (i32, i32) {
    %c0_i32 = arith.constant 0 : i32
    %c0_i32_0 = arith.constant 0 : i32
    %c0_i32_1 = arith.constant 0 : i32
    return %c0_i32, %c0_i32_0 : i32, i32
  }
  func.func @transform_3(%arg0: i32, %arg1: i32) -> (i32, i32, i32) {
    %c0_i32 = arith.constant 0 : i32
    %c0_i32_0 = arith.constant 0 : i32
    return %arg0, %c0_i32, %arg1 : i32, i32, i32
  }
}

</mosaic_0001>

<bundles_post_ra>
// kernel: residual_module_mi.1
= control target key start
LH: loop header
LB: loop body
LE: loop exit
PB: predicated region body
PF: predicated region fallthrough
CT: control target
= control target key end

     0   :  { %vm28_vm0 = vcmask 1043456   ;;  %v210_v2 = vmov 0.0   ;;  %v211_v5 = vmov 0   ;;  %vm24_vm1 = vcmask 31744   ;;  %s260_s0 = inlined_call_operand.vmem [shape: f32[2,4,256], index: 0, kind: input, shape index: {}]   ;;  %s261_s1 = inlined_call_operand.vmem [shape: f32[8,4], index: 1, kind: input, shape index: {}]   ;;  %s262_s2 = inlined_call_operand.vmem [shape: f32[8,1], index: 2, kind: input, shape index: {}]   ;;  %s263_s3 = inlined_call_operand.vmem [shape: f32[2,8,256], index: 3, kind: output, shape index: {}]  }
   0x1   :  { %v16_v0 = vld [vmem:[%s260_s0] sm:$0xff]  ;;  %v199_v1 = vld [vmem:[%s260_s0 + $0x8] sm:$0xff]  ;;  %97 = vmatprep.mubr.f32.mxu0 %v210_v2  ;;  %180 = vmatprep.mubr.f32.mxu1 %v210_v2 }
   0x2   :  { %v23_v3 = vcombine.high %v16_v0, %v16_v0  ;;  %v111_v4 = vcombine.high %v199_v1, %v199_v1  ;;  %207 = vset.pattern.permute.xlu0 %v211_v5  ;;  %v15_v6 = vld [vmem:[%s262_s2] sm:$0xff] }
   0x3   :  { %v14_v7 = vld [vmem:[%s261_s1] sm:$0xff]  ;;  %19 = vperm.xlu0 %207, %v15_v6  }
   0x4   :  { %196 = vmatprep.subr.msk.mxu0 %vm28_vm0, %v23_v3  ;;  %200 = vmatprep.subr.msk.mxu1 %vm28_vm0, %v111_v4 }
   0x5   :  { %197 = vmatpush1.msk.msra.mxu0 %vm28_vm0, %v16_v0  ;;  %201 = vmatpush1.msk.msra.mxu1 %vm28_vm0, %v199_v1 }
   0x6   :  { %198 = vmatmul.mubr.msk.f32.vlgmr.msra.gmra.mxu0 %vm24_vm1, %v14_v7  ;;  %202 = vmatmul.mubr.msk.f32.vlgmr.msra.gmra.mxu1 %vm24_vm1, %v14_v7 }
  0x7e   :  { %v20_v8 = vpop.permute.xlu0 %19 }
  0xc6   :  { %v99_v9 = vpop.f32.mrf.mxu0  ;;  %v182_v10 = vpop.f32.mrf.mxu1 }
  0xc7   :  { %v100_v11 = vadd.f32 %v99_v9, %v20_v8  ;;  %v183_v12 = vadd.f32 %v182_v10, %v20_v8 }
  0xc8   :  { %v101_v13 = vpop.f32.mrf.mxu0  ;;  %v184_v14 = vpop.f32.mrf.mxu1 }
  0xc9   :  { %v104_v15 = vmax.f32 %v100_v11, 0.0  ;;  %v187_v16 = vmax.f32 %v183_v12, 0.0  ;;  %v102_v17 = vadd.f32 %v101_v13, %v20_v8  ;;  %v185_v18 = vadd.f32 %v184_v14, %v20_v8 }
  0xcb   :  { %106 = vst [vmem:[%s263_s3] sm:$0xff] %v104_v15  ;;  %203 = vst [vmem:[%s263_s3 + $0x10] sm:$0xff] %v187_v16  ;;  %v105_v19 = vmax.f32 %v102_v17, 0.0  ;;  %v188_v20 = vmax.f32 %v185_v18, 0.0 }
  0xcd   :  { %107 = vst [vmem:[%s263_s3 + $0x8] sm:$0xff] %v105_v19  ;;  %204 = vst [vmem:[%s263_s3 + $0x18] sm:$0xff] %v188_v20 }

</bundles_post_ra>
